<compile_context>
chip_gen: v7x
topology: tpu7x:2x2x1
jax: 0.10.0
libtpu: 0.0.40
codegen_flags: <defaults>
</compile_context>

<pallas_src>
import functools

import jax
import jax.numpy as jnp
from jax.experimental import pallas as pl
from jax.experimental.pallas import tpu as pltpu


def channel_gate_kernel(x_ref, w1_ref, b1_ref, w2_ref, b2_ref, o_ref, *, hw):
    # x_ref block: [Bb, C, HWp] (C on sublanes, padded spatial on lanes)
    x = x_ref[...]                                   # native dtype
    bb, c, hwp = x.shape
    xf = x.astype(jnp.float32)

    # --- global average pool (zero padding leaves the sum unchanged) ---
    sum_pool = jnp.sum(xf, axis=-1, keepdims=True) * (1.0 / hw)      # [Bb,C,1]

    # --- global max pool (mask padded lanes only if HW was padded) ---
    if hwp != hw:
        lane = jax.lax.broadcasted_iota(jnp.int32, xf.shape, 2)
        max_src = jnp.where(lane < hw, xf, jnp.finfo(jnp.float32).min)
    else:
        max_src = xf
    max_pool = jnp.max(max_src, axis=-1, keepdims=True)              # [Bb,C,1]

    # --- place the two pooled vectors as two lane columns: [Bb, C, 2] ---
    col = jax.lax.broadcasted_iota(jnp.int32, (bb, c, 2), 2)
    pools = jnp.where(col == 0, sum_pool, max_pool)                  # [Bb,C,2]

    w1 = w1_ref[...].astype(jnp.float32)             # [Cr, C]
    b1 = b1_ref[...].astype(jnp.float32)             # [Cr, 1]
    w2 = w2_ref[...].astype(jnp.float32)             # [C, Cr]
    b2 = b2_ref[...].astype(jnp.float32)             # [C, 1]
    cr = w1.shape[0]

    # --- fused shared MLP over both pooled vectors (2 matmuls, not 4) ---
    w1b = jnp.broadcast_to(w1, (bb, cr, c))
    w2b = jnp.broadcast_to(w2, (bb, c, cr))
    h = jnp.einsum("brc,bcp->brp", w1b, pools,
                   preferred_element_type=jnp.float32) + b1          # [Bb,Cr,2]
    h = jnp.maximum(h, 0.0)                                          # ReLU
    att2 = jnp.einsum("bcr,brp->bcp", w2b, h,
                      preferred_element_type=jnp.float32) + b2       # [Bb,C,2]
    att = jnp.sum(att2, axis=-1, keepdims=True)                      # [Bb,C,1]

    # sigmoid: exp lands on the EUP; reciprocal on the tiny [Bb,C,1] vector
    scale = pl.reciprocal(1.0 + jnp.exp(-att))                       # exact

    # gate in the input dtype (keeps bf16 inputs on the bf16 VPU path)
    o_ref[...] = (x * scale.astype(x.dtype)).astype(o_ref.dtype)


def _pick_batch_block(batch, per_image_bytes, target_bytes):
    """Largest batch group with block <= ~target_bytes, >=2 grid steps, B % Bb == 0."""
    bb = max(1, min(batch, int(target_bytes) // int(per_image_bytes)))
    if batch >= 2:
        bb = max(1, min(bb, batch // 2))   # keep >= 2 steps for v7x megacore
    while batch % bb:
        bb -= 1
    return bb


def channel_gate(x, w1, b1, w2, b2, *, target_block_bytes=2 * 1024 * 1024):
    """ChannelGate forward, PyTorch NCHW semantics.

    x: [B, C, H, W]; w1: [C//r, C]; b1: [C//r]; w2: [C, C//r]; b2: [C]
    (PyTorch nn.Linear weight layout: [out_features, in_features]).
    """
    B, C, H, W = x.shape
    HW = H * W
    Cr = w1.shape[0]
    itemsize = jnp.dtype(x.dtype).itemsize

    # lane-dense spatial axis: pad H*W up to a multiple of 128
    HWp = ((HW + 127) // 128) * 128
    x_flat = x.reshape(B, C, HW)
    if HWp != HW:
        x_flat = jnp.pad(x_flat, ((0, 0), (0, 0), (0, HWp - HW)))

    per_image_bytes = C * HWp * itemsize
    Bb = _pick_batch_block(B, per_image_bytes, target_block_bytes)
    grid = (B // Bb,)

    # VMEM budget: in + out blocks, each double-buffered, plus the tiny params.
    block_bytes = Bb * per_image_bytes
    param_bytes = (Cr * C + Cr + C * Cr + C) * 4
    vmem_limit = max(32 * 1024 * 1024, 4 * block_bytes + 4 * param_bytes + (2 << 20))

    b1c = b1.reshape(Cr, 1)
    b2c = b2.reshape(C, 1)

    kernel = functools.partial(channel_gate_kernel, hw=HW)

    out_flat = pl.pallas_call(
        kernel,
        out_shape=jax.ShapeDtypeStruct((B, C, HWp), x.dtype),
        grid_spec=pltpu.PrefetchScalarGridSpec(
            num_scalar_prefetch=0,
            grid=grid,
            in_specs=[
                pl.BlockSpec((Bb, C, HWp), lambda b: (b, 0, 0)),
                pl.BlockSpec((Cr, C), lambda b: (0, 0)),
                pl.BlockSpec((Cr, 1), lambda b: (0, 0)),
                pl.BlockSpec((C, Cr), lambda b: (0, 0)),
                pl.BlockSpec((C, 1), lambda b: (0, 0)),
            ],
            out_specs=pl.BlockSpec((Bb, C, HWp), lambda b: (b, 0, 0)),
        ),
        compiler_params=pltpu.CompilerParams(
            dimension_semantics=("parallel",),
            vmem_limit_bytes=int(vmem_limit),
        ),
    )(x_flat, w1, b1c, w2, b2c)

    if HWp != HW:
        out_flat = out_flat[:, :, :HW]
    return out_flat.reshape(B, C, H, W)


def channel_gate_ref(x, w1, b1, w2, b2):
    # pure-JAX reference (PyTorch semantics)
    B, C, H, W = x.shape
    xf = x.astype(jnp.float32).reshape(B, C, H * W)
    avg = jnp.mean(xf, axis=-1)                            # [B, C]
    mx = jnp.max(xf, axis=-1)                              # [B, C]

    def mlp(p):                                            # p: [B, C]
        h = jnp.maximum(p @ w1.T + b1, 0.0)
        return h @ w2.T + b2

    att = mlp(avg) + mlp(mx)                               # [B, C]
    scale = jax.nn.sigmoid(att)[:, :, None, None]
    return (x.astype(jnp.float32) * scale).astype(x.dtype)


if __name__ == "__main__":
    gate_channels = 16
    reduction_ratio = 8
    B, C, H, W = 2, gate_channels, 16, 16
    Cr = gate_channels // reduction_ratio

    key = jax.random.PRNGKey(0)
    kx, k1, k2, k3, k4, kx2 = jax.random.split(key, 6)
    x = jax.random.normal(kx, (B, C, H, W), dtype=jnp.float32)
    # PyTorch Linear weight shapes: [out, in]
    w1 = jax.random.normal(k1, (Cr, C), dtype=jnp.float32) * 0.1
    b1 = jax.random.normal(k2, (Cr,), dtype=jnp.float32) * 0.1
    w2 = jax.random.normal(k3, (C, Cr), dtype=jnp.float32) * 0.1
    b2 = jax.random.normal(k4, (C,), dtype=jnp.float32) * 0.1

    out = jax.block_until_ready(channel_gate(x, w1, b1, w2, b2))
    ref = channel_gate_ref(x, w1, b1, w2, b2)
    assert out.shape == x.shape and out.dtype == x.dtype
    assert jnp.allclose(out, ref, atol=1e-5, rtol=1e-5)

    # second config: H*W = 49 (not a multiple of 128) exercises the lane-pad
    # + masked-max path flagged in the review.
    B2, H2, W2 = 3, 7, 7
    x2 = jax.random.normal(kx2, (B2, C, H2, W2), dtype=jnp.float32)
    out2 = jax.block_until_ready(channel_gate(x2, w1, b1, w2, b2))
    ref2 = channel_gate_ref(x2, w1, b1, w2, b2)
    assert out2.shape == x2.shape and out2.dtype == x2.dtype
    assert jnp.allclose(out2, ref2, atol=1e-5, rtol=1e-5)

    print("KERNEL_OK")
</pallas_src>

<mosaic_0001>
module attributes {stable_mosaic.version = 11 : i64} {
  func.func @channel_gate_kernel(%arg0: i32, %arg1: memref<1x16x256xf32, #tpu.memory_space<vmem>>, %arg2: memref<2x16xf32, #tpu.memory_space<vmem>>, %arg3: memref<2x1xf32, #tpu.memory_space<vmem>>, %arg4: memref<16x2xf32, #tpu.memory_space<vmem>>, %arg5: memref<16x1xf32, #tpu.memory_space<vmem>>, %arg6: memref<1x16x256xf32, #tpu.memory_space<vmem>>) attributes {dimension_semantics = [#tpu.dimension_semantics<parallel>], iteration_bounds = array<i64: 2>, scalar_prefetch = 0 : i64, scratch_operands = 0 : i64, tpu.core_type = #tpu.core_type<tc>, window_params = [{transform_indices = @transform_0, window_bounds = array<i64: 1, 16, 256>}, {pipeline_mode = #tpu.pipeline_mode<synchronous>, transform_indices = @transform_1, window_bounds = array<i64: 2, 16>}, {pipeline_mode = #tpu.pipeline_mode<synchronous>, transform_indices = @transform_2, window_bounds = array<i64: 2, 1>}, {pipeline_mode = #tpu.pipeline_mode<synchronous>, transform_indices = @transform_3, window_bounds = array<i64: 16, 2>}, {pipeline_mode = #tpu.pipeline_mode<synchronous>, transform_indices = @transform_4, window_bounds = array<i64: 16, 1>}, {transform_indices = @transform_5, window_bounds = array<i64: 1, 16, 256>}]} {
    %c0 = arith.constant 0 : index
    %c0_0 = arith.constant 0 : index
    %c0_1 = arith.constant 0 : index
    %0 = vector.load %arg1[%c0, %c0_0, %c0_1] : memref<1x16x256xf32, #tpu.memory_space<vmem>>, vector<1x16x256xf32>
    %cst = arith.constant dense<0.000000e+00> : vector<1x16xf32>
    %1 = vector.multi_reduction <add>, %0, %cst [2] : vector<1x16x256xf32> to vector<1x16xf32>
    %2 = vector.shape_cast %1 : vector<1x16xf32> to vector<1x16x1xf32>
    %cst_2 = arith.constant 3.906250e-03 : f32
    %3 = vector.broadcast %cst_2 : f32 to vector<1x16x1xf32>
    %4 = arith.mulf %2, %3 : vector<1x16x1xf32>
    %cst_3 = arith.constant dense<0xFF800000> : vector<1x16xf32>
    %5 = vector.multi_reduction <maximumf>, %0, %cst_3 [2] : vector<1x16x256xf32> to vector<1x16xf32>
    %6 = vector.shape_cast %5 : vector<1x16xf32> to vector<1x16x1xf32>
    %7 = tpu.iota {dimensions = array<i32: 2>} : vector<1x16x2xi32>
    %c0_i32 = arith.constant 0 : i32
    %8 = vector.broadcast %c0_i32 : i32 to vector<1x16x2xi32>
    %9 = arith.cmpi eq, %7, %8 : vector<1x16x2xi32>
    %10 = vector.shape_cast %4 : vector<1x16x1xf32> to vector<1x16x1xf32>
    %11 = vector.broadcast %10 : vector<1x16x1xf32> to vector<1x16x2xf32>
    %12 = vector.shape_cast %6 : vector<1x16x1xf32> to vector<1x16x1xf32>
    %13 = vector.broadcast %12 : vector<1x16x1xf32> to vector<1x16x2xf32>
    %14 = arith.select %9, %11, %13 : vector<1x16x2xi1>, vector<1x16x2xf32>
    %c0_4 = arith.constant 0 : index
    %c0_5 = arith.constant 0 : index
    %15 = vector.load %arg2[%c0_4, %c0_5] : memref<2x16xf32, #tpu.memory_space<vmem>>, vector<2x16xf32>
    %c0_6 = arith.constant 0 : index
    %c0_7 = arith.constant 0 : index
    %16 = vector.load %arg3[%c0_6, %c0_7] : memref<2x1xf32, #tpu.memory_space<vmem>>, vector<2x1xf32>
    %c0_8 = arith.constant 0 : index
    %c0_9 = arith.constant 0 : index
    %17 = vector.load %arg4[%c0_8, %c0_9] : memref<16x2xf32, #tpu.memory_space<vmem>>, vector<16x2xf32>
    %c0_10 = arith.constant 0 : index
    %c0_11 = arith.constant 0 : index
    %18 = vector.load %arg5[%c0_10, %c0_11] : memref<16x1xf32, #tpu.memory_space<vmem>>, vector<16x1xf32>
    %19 = vector.shape_cast %15 : vector<2x16xf32> to vector<1x2x16xf32>
    %20 = vector.shape_cast %17 : vector<16x2xf32> to vector<1x16x2xf32>
    "tpu.trace_start"() <{level = 10 : i32, message = "brc,bcp->brp"}> : () -> ()
    %cst_12 = arith.constant dense<0.000000e+00> : vector<1x2x2xf32>
    %21 = tpu.matmul %19, %14, %cst_12 {dimension_numbers = #tpu.dot_dimension_numbers<[2], [1], [1], [2], [0, 0, 0, 1, 1, 2], [0], [0]>} : vector<1x2x16xf32>, vector<1x16x2xf32>, vector<1x2x2xf32> -> vector<1x2x2xf32>
    "tpu.trace_stop"() : () -> ()
    %22 = vector.shape_cast %16 : vector<2x1xf32> to vector<1x2x1xf32>
    %23 = vector.broadcast %22 : vector<1x2x1xf32> to vector<1x2x2xf32>
    %24 = arith.addf %21, %23 : vector<1x2x2xf32>
    %cst_13 = arith.constant 0.000000e+00 : f32
    %25 = vector.broadcast %cst_13 : f32 to vector<1x2x2xf32>
    %26 = arith.maximumf %24, %25 : vector<1x2x2xf32>
    "tpu.trace_start"() <{level = 10 : i32, message = "bcr,brp->bcp"}> : () -> ()
    %cst_14 = arith.constant dense<0.000000e+00> : vector<1x16x2xf32>
    %27 = tpu.matmul %20, %26, %cst_14 {dimension_numbers = #tpu.dot_dimension_numbers<[2], [1], [1], [2], [0, 0, 0, 1, 1, 2], [0], [0]>} : vector<1x16x2xf32>, vector<1x2x2xf32>, vector<1x16x2xf32> -> vector<1x16x2xf32>
    "tpu.trace_stop"() : () -> ()
    %28 = vector.shape_cast %18 : vector<16x1xf32> to vector<1x16x1xf32>
    %29 = vector.broadcast %28 : vector<1x16x1xf32> to vector<1x16x2xf32>
    %30 = arith.addf %27, %29 : vector<1x16x2xf32>
    %cst_15 = arith.constant dense<0.000000e+00> : vector<1x16xf32>
    %31 = vector.multi_reduction <add>, %30, %cst_15 [2] : vector<1x16x2xf32> to vector<1x16xf32>
    %32 = vector.shape_cast %31 : vector<1x16xf32> to vector<1x16x1xf32>
    %cst_16 = arith.constant 0.000000e+00 : f32
    %33 = vector.broadcast %cst_16 : f32 to vector<1x16x1xf32>
    %34 = arith.subf %33, %32 : vector<1x16x1xf32>
    %35 = math.exp %34 : vector<1x16x1xf32>
    %cst_17 = arith.constant 1.000000e+00 : f32
    %36 = vector.broadcast %cst_17 : f32 to vector<1x16x1xf32>
    %37 = arith.addf %36, %35 : vector<1x16x1xf32>
    %38 = tpu.reciprocal %37 : vector<1x16x1xf32> -> vector<1x16x1xf32>
    %39 = vector.broadcast %38 : vector<1x16x1xf32> to vector<1x16x256xf32>
    %40 = arith.mulf %0, %39 : vector<1x16x256xf32>
    %c0_18 = arith.constant 0 : index
    %c0_19 = arith.constant 0 : index
    %c0_20 = arith.constant 0 : index
    %41 = vector.load %arg6[%c0_18, %c0_19, %c0_20] : memref<1x16x256xf32, #tpu.memory_space<vmem>>, vector<1x16x256xf32>
    tpu.vector_store %arg6[%c0_18, %c0_19, %c0_20], %40 {strides = array<i32>} : memref<1x16x256xf32, #tpu.memory_space<vmem>>, vector<1x16x256xf32>,
    return
  }
  func.func @transform_0(%arg0: i32) -> (i32, i32, i32) {
    %c0_i32 = arith.constant 0 : i32
    %c0_i32_0 = arith.constant 0 : i32
    %c0_i32_1 = arith.constant 0 : i32
    return %arg0, %c0_i32, %c0_i32_0 : i32, i32, i32
  }
  func.func @transform_1(%arg0: i32) -> (i32, i32) {
    %c0_i32 = arith.constant 0 : i32
    %c0_i32_0 = arith.constant 0 : i32
    %c0_i32_1 = arith.constant 0 : i32
    return %c0_i32, %c0_i32_0 : i32, i32
  }
  func.func @transform_2(%arg0: i32) -> (i32, i32) {
    %c0_i32 = arith.constant 0 : i32
    %c0_i32_0 = arith.constant 0 : i32
    %c0_i32_1 = arith.constant 0 : i32
    return %c0_i32, %c0_i32_0 : i32, i32
  }
  func.func @transform_3(%arg0: i32) -> (i32, i32) {
    %c0_i32 = arith.constant 0 : i32
    %c0_i32_0 = arith.constant 0 : i32
    %c0_i32_1 = arith.constant 0 : i32
    return %c0_i32, %c0_i32_0 : i32, i32
  }
  func.func @transform_4(%arg0: i32) -> (i32, i32) {
    %c0_i32 = arith.constant 0 : i32
    %c0_i32_0 = arith.constant 0 : i32
    %c0_i32_1 = arith.constant 0 : i32
    return %c0_i32, %c0_i32_0 : i32, i32
  }
  func.func @transform_5(%arg0: i32) -> (i32, i32, i32) {
    %c0_i32 = arith.constant 0 : i32
    %c0_i32_0 = arith.constant 0 : i32
    %c0_i32_1 = arith.constant 0 : i32
    return %arg0, %c0_i32, %c0_i32_0 : i32, i32, i32
  }
}

</mosaic_0001>

<bundles_post_ra>
// kernel: tpu_custom_call.1
= control target key start
LH: loop header
LB: loop body
LE: loop exit
PB: predicated region body
PF: predicated region fallthrough
CT: control target
= control target key end

     0   :  { %10 = vsyncpa [#allocation3], 0  ;;  %s1010_s0 = inlined_call_operand.hbm [shape: f32[2,16,256], index: 0, kind: input, shape index: {}]   ;;  %s1011_s1 = inlined_call_operand.vmem [shape: f32[2,16], index: 1, kind: input, shape index: {}]   ;;  %s1012_s2 = inlined_call_operand.vmem [shape: f32[2,1], index: 2, kind: input, shape index: {}]   ;;  %s1013_s3 = inlined_call_operand.vmem [shape: f32[16,2], index: 3, kind: input, shape index: {}]   ;;  %s1014_s4 = inlined_call_operand.vmem [shape: f32[16,1], index: 4, kind: input, shape index: {}]   ;;  %s1015_s5 = inlined_call_operand.hbm [shape: f32[2,16,256], index: 5, kind: output, shape index: {}]  }
   0x1   :  { %12 = vsyncpa [#allocation3 + $0x1], 0 }
   0x2   :  { %13 = vsyncpa [#allocation4], 0 }
   0x3   :  { %15 = vsyncpa [#allocation4 + $0x1], 0  ;;  %s802_s18 = smov 0   ;;  %s804_s19 = smov 0  }
   0x4   :  { %s806_s20 = smov 0   ;;  %s808_s21 = smov 0  }
   0x5 LB: > { %s823_s22 = sadd.s32 4294967295, %s760_s21   ;;  %s559_s23 = sadd.s32 4294967294, %s760_s21   ;;  %s760_s21 = sphi %s808_s21, %s1028_s21   ;;  %s756_s20 = sphi %s806_s20, %s1027_s20   ;;  %s752_s19 = sphi %s804_s19, %s1026_s19   ;;  %s748_s18 = sphi %s802_s18, %s1025_s18  }
   0x6   : > { %s827_s24 = sadd.s32 1, %s760_s21   ;;  %s28_s25 = sadd.s32 1, %s756_s20 }
   0x7   : > { %s25_s26 = ssub.s32 %s760_s21, %s827_s24  ;;  %p35_p0 = scmp.ne.s32.totalorder %s756_s20, %s752_s19 }
   0x8   : > { %p26_p1 = scmp.eq.s32.totalorder %s25_s26, 0  ;;  %p36_p2 = scmp.eq.s32.totalorder %s760_s21, 0 }
   0x9   : > { %p41_p3 = scmp.ne.s32.totalorder %s752_s19, %s748_s18  ;;  %p42_p4 = scmp.eq.s32.totalorder %s823_s22, 0 }
   0xa   : > { %s839_s27 = scalar_select %p26_p1, %s756_s20, %s28_s25  }
   0xb   : > { %p841_p5 = por %p36_p2, %p35_p0  ;;  %p845_p6 = por %p42_p4, %p41_p3 }
   0xc   : > { %p149_p7 = scmp.eq.s32.totalorder %s823_s22, 1  ;;  %p155_p8 = scmp.eq.s32.totalorder %s559_s23, 1 }
   0xd   : > { %p612_p10 = scmp.lt.s32.totalorder %s760_s21, 2  ;;  %s187_s7 = sand.u32 1, %s756_s20  }
   0xe   : > { %p852_p11 = por %p149_p7, %p35_p0  ;;  %p856_p12 = por %p155_p8, %p41_p3 }
   0xf   : > { %s577_s8 = sshll.u32 %s760_s21, 9  ;;  %s562_s9 = sshll.u32 %s187_s7, 5 }
  0x10   : > { %s1019_s30 = scalar_select %p852_p11, 1, 0 }
  0x11   : > { %s1020_s6 = scalar_select %p856_p12, 1, 0 }
  0x12   : > { %s865_s12 = scalar_lea.hbm %s1010_s0, %s577_s8  ;;  %s191_s13 = scalar_lea.vmem [#allocation2], %s562_s9 }
  0x13   : > { %s198_s14 = sshll.u32 %s191_s13, 4  ;;  %p869_p13 = pnand %p612_p10, %p841_p5  ;;  %s873_s14 = int_to_ptr.vmem [resolvable:$true] %s198_s14 }
  0x14   : > { %s875_s16 = scalar_lea.sflag [#allocation3], %s187_s7  ;;  %s664_s17 = scalar_lea.hbm %s865_s12, 512 }
  0x15   : > { %p665_p0 = scmp.ne.s32.totalorder %s865_s12, %s664_s17  ;;  %p666_p1 = pneg %p869_p13 }
  0x16   : > { %s669_s26 = scalar_lea.hbm %s1010_s0, 1024  ;;  %p670_p4 = scmp.lt.u32.totalorder %s865_s12, %s1010_s0 }
  0x17   : > { %p667_p2 = pnand %p666_p1, %p665_p0  ;;  %p671_p5 = scmp.lt.u32.totalorder %s669_s26, %s664_s17 }
  0x18   : > { %p673_p8 = scmp.lt.u32.totalorder %s664_s17, %s865_s12 }
  0x19   : > { %p668_p3 = pneg %p667_p2  ;;  %p672_p7 = por %p671_p5, %p670_p4 }
  0x1b   : > { %p674_p10 = por %p673_p8, %p672_p7 }
  0x1d   : > { %p675_p9 = pnand %p674_p10, %p668_p3 }
  0x1f   : > { %678 = shalt.err (!%p675_p9)
}
  0x20   : > { %s679_s7 = scalar_lea.vmem %s873_s14, 512  ;;  %s762_s9 = smov [#allocation2]  }
  0x21   : > { %p680_p0 = scmp.ne.s32.totalorder %s873_s14, %s679_s7  ;;  %s684_s10 = sshll.u32 %s762_s9, 4  ;;  %s685_s10 = int_to_ptr.vmem [resolvable:$false] %s684_s10 }
  0x22   : > { %s686_s11 = scalar_lea.vmem %s685_s10, 1024  ;;  %p687_p11 = scmp.lt.s32.totalorder %s873_s14, %s685_s10 }
  0x23   : > { %p682_p2 = pnand %p680_p0, %p666_p1  ;;  %p688_p4 = scmp.lt.s32.totalorder %s686_s11, %s679_s7 }
  0x25   : > { %p683_p12 = pneg %p682_p2  ;;  %p689_p5 = por %p688_p4, %p687_p11 }
  0x27   : > { %p690_p7 = pnand %p689_p5, %p683_p12 }
  0x29   : > { %693 = shalt.err (!%p690_p7)
}
  0x2a   : > { %s763_s13 = smov 256   ;;  %s764_s17 = smov 16  }
  0x2b   : > { %607 = dma.hbm_to_vmem [thread:$0]  (!%p869_p13), %s865_s12, 512, %s873_s14, %s875_s16, %s763_s13, %s763_s13, %s764_s17  }
  0x2c   : > { %p565_p9 = scmp.ge.s32.totalorder %s760_s21, 1  ;;  %p206_p1 = scmp.lt.s32.totalorder %s760_s21, 3 }
  0x2e   : > { %p207_p3 = pnand %p565_p9, %p206_p1 }
  0x2f   : > { %s906_s23 = sand.u32 (!%p207_p3), 1, %s752_s19  }
  0x30   : > { %210 = sbr.rel (%p207_p3) target bundleno = 834 (0x342), region = 40  ;;  %s566_s25 = sshll.u32 (!%p207_p3), %s906_s23, 5 }
  0x31   : > { %s213_s26 = scalar_lea.sflag (!%p207_p3), [#allocation3], %s906_s23  ;;  %s216_s28 = scalar_lea.vmem (!%p207_p3), [#allocation2], %s566_s25 }
  0x37   : > { %739 = dma.done.wait (%p845_p6), %s213_s26, 512  }
  0x38   : > { %741 = vsyncadd (%p845_p6), %s213_s26, 4294966784  ;;  %v916_v0 = vld [vmem:[%s216_s28] sm:$0xff]  ;;  %v918_v1 = vld [vmem:[%s216_s28 + $0x8] sm:$0xff]  ;;  %v765_v8 = vmov 0.0|0.0   ;;  %vm766_vm0 = vmmov 0   ;;  %v767_v9 = vmov 0.0   ;;  %v261_v12 = vlaneseq }
  0x39   : > { %v920_v2 = vld [vmem:[%s216_s28 + $0x10] sm:$0xff]  ;;  %v247_v3 = vadd.f32 %v918_v1, %v916_v0  ;;  %v255_v4 = vmax.f32 %v916_v0, %v918_v1  ;;  %v926_v5 = vld [vmem:[%s216_s28 + $0x18] sm:$0xff]  ;;  %597 = vmatprep.subr.bf16.mxu0 %v765_v8  ;;  %589 = vmatprep.mubr.msk.f32.mxu0 %vm766_vm0, %v767_v9  ;;  %v267_v10 = vld [vmem:[%s1012_s2] sm:$0x3]  ;;  %v768_v11 = vmov 0   ;;  %vm277_vm2 = vcmask 130048  }
  0x3a   : > { %v250_v6 = vadd.f32 %v926_v5, %v920_v2  ;;  %v258_v7 = vmax.f32 %v920_v2, %v926_v5  ;;  %654 = vset.pattern.permute.xlu0 %v768_v11  ;;  %655 = vset.pattern.permute.xlu1 %v768_v11  ;;  %v262_v14 = vand.u32 127, %v261_v12  ;;  %v266_v23 = vld [vmem:[%s1011_s1] sm:$0x3]  ;;  %vm362_vm3 = vcmask 15360   ;;  %v271_v26 = vld [vmem:[%s1014_s4 + $0x8] sm:$0xff]  ;;  %s578_s26 = sshll.u32 %s823_s22, 9 }
  0x3b   : > { %248 = vadd.xlane.f32.xlu0 %v247_v3  ;;  %256 = vmax.xlane.f32.xlu1 %v255_v4  ;;  %v268_v24 = vld [vmem:[%s1013_s3] sm:$0xff]  ;;  %vm369_vm4 = vcmask 1041408   ;;  %v269_v32 = vld [vmem:[%s1013_s3 + $0x8] sm:$0xff]  ;;  %s242_s28 = scalar_lea.vmem [#allocation5], %s566_s25  ;;  %s962_s15 = scalar_lea.hbm %s1015_s5, %s578_s26 }
  0x3c   : > { %vm263_vm1 = vcmp.eq.s32.totalorder %v262_v14, 0  ;;  %594 = vmatprep.mubr.msk.f32.mxu1 %vm362_vm3, %v268_v24  ;;  %v270_v25 = vld [vmem:[%s1014_s4] sm:$0xff]  ;;  %s486_s29 = sshll.u32 %s242_s28, 4  ;;  %s473_s22 = scalar_lea.sflag [#allocation4], %s906_s23  ;;  %s964_s29 = int_to_ptr.vmem [resolvable:$true] %s486_s29 }
  0x3d   : > { %s694_s25 = scalar_lea.vmem %s964_s29, 512  ;;  %p1022_p11 = scmp.ne.s32.totalorder %s1019_s30, 0 }
  0x3e   : > { %p695_p6 = scmp.ne.s32.totalorder %s964_s29, %s694_s25  ;;  %s769_s16 = smov [#allocation5]  }
  0x3f   : > { %251 = vadd.xlane.f32.xlu0 %v250_v6  ;;  %259 = vmax.xlane.f32.xlu1 %v258_v7  ;;  %s698_s8 = sshll.u32 %s769_s16, 4  ;;  %s699_s8 = int_to_ptr.vmem [resolvable:$false] %s698_s8 }
  0x40   : > { %p696_p12 = pnand %p695_p6, %p1022_p11  ;;  %s700_s7 = scalar_lea.vmem %s699_s8, 1024 }
  0x41   : > { %p701_p8 = scmp.lt.s32.totalorder %s964_s29, %s699_s8  ;;  %p702_p10 = scmp.lt.s32.totalorder %s700_s7, %s694_s25 }
  0x42   : > { %p697_p13 = pneg %p696_p12 }
  0x43   : > { %p703_p0 = por %p702_p10, %p701_p8 }
  0x45   : > { %p704_p2 = pnand %p703_p0, %p697_p13 }
  0x50   : > { %354 = vperm.xlu1 %655, %v270_v25  }
  0x54   : > { %359 = vperm.xlu1 %655, %v271_v26  }
  0x55   : > { %274 = vperm.xlu0 %654, %v267_v10  }
  0xc8   : > { %v249_v13 = vpop.xlane.xlu0 %248  ;;  %v257_v15 = vpop.xlane.xlu1 %256 }
  0xc9   : > { %v253_v16 = vmul.f32 0.00390625, %v249_v13 }
  0xcb   : > { %v264_v20 = vsel %vm263_vm1, %v253_v16, %v257_v15 }
  0xcc   : > { %v252_v17 = vpop.xlane.xlu0 %251  ;;  %v260_v18 = vpop.xlane.xlu1 %259 }
  0xcd   : > { %v254_v19 = vmul.f32 0.00390625, %v252_v17 }
  0xcf   : > { %v265_v21 = vsel %vm263_vm1, %v254_v19, %v260_v18 }
  0xd0   : > { %v598_v22 = vpack.c.bf16 %v265_v21, %v264_v20  ;;  %v355_v33 = vpop.permute.xlu1 %354 }
  0xd2   : > { %599 = vmatpush3.bf16.msra.mxu0 %v598_v22 }
  0xd4   : > { %v275_v27 = vpop.permute.xlu0 %274  ;;  %v360_v34 = vpop.permute.xlu1 %359 }
  0xd5   : > { %590 = vmatmul.mubr.msk.f32.vlgmr.msra.gmra.mrb[0].mxu0 %vm277_vm2, %v266_v23 }
 0x1a8   : > { %v347_v28 = vpop.f32.mrb[0].mxu0 }
 0x1a9   : > { %v348_v29 = vadd.f32 %v347_v28, %v275_v27  ;;  %v591_v30 = vpop.f32.mrb[1].mxu0 }
 0x1ab   : > { %v351_v31 = vmax.f32 %v348_v29, 0.0 }
 0x1ad   : > { %592 = vmatprep.subr.msk.mxu1 %vm369_vm4, %v351_v31 }
 0x1ae   : > { %593 = vmatpush3.msk.msra.mxu1 %vm369_vm4, %v351_v31 }
 0x1af   : > { %595 = vmatmul.mubr.msk.f32.vlgmr.msra.gmra.mrb[0].mxu1 %vm362_vm3, %v269_v32 }
 0x282   : > { %v596_v35 = vpop.f32.mrb[0].mxu1 }
 0x283   : > { %v445_v36 = vadd.f32 %v596_v35, %v360_v34  ;;  %v439_v37 = vpop.f32.mrb[1].mxu1 }
 0x284   : > { %v440_v38 = vadd.f32 %v439_v37, %v355_v33 }
 0x285   : > { %v451_v39 = vsel %vm362_vm3, %v445_v36, 0.0 }
 0x286   : > { %452 = vadd.xlane.f32.xlu0 %v451_v39  ;;  %v448_v40 = vsel %vm362_vm3, %v440_v38, 0.0 }
 0x287   : > { %449 = vadd.xlane.f32.xlu1 %v448_v40 }
 0x313   : > { %v453_v41 = vpop.xlane.xlu0 %452 }
 0x314   : > { %v455_v42 = vsub.f32 0.0, %v453_v41  ;;  %v450_v43 = vpop.xlane.xlu1 %449 }
 0x315   : > { %v454_v44 = vsub.f32 0.0, %v450_v43 }
 0x316   : > { %v458_v45 = vmul.f32 1.442695, %v455_v42 }
 0x317   : > { %v456_v46 = vmul.f32 1.442695, %v454_v44 }
 0x318   : > { %656 = vpow2.f32 %v458_v45 }
 0x319   : > { %658 = vpow2.f32 %v456_v46 }
 0x322   : > { %v657_v47 = vpop.eup %656 }
 0x323   : > { %v659_v48 = vpop.eup %658  ;;  %v461_v49 = vadd.f32 1.0, %v657_v47 }
 0x324   : > { %v460_v50 = vadd.f32 1.0, %v659_v48 }
 0x325   : > { %660 = vrcp.f32 %v461_v49 }
 0x326   : > { %662 = vrcp.f32 %v460_v50 }
 0x32f   : > { %v661_v51 = vpop.eup %660 }
 0x330   : > { %v663_v52 = vpop.eup %662  ;;  %v466_v53 = vmul.f32 %v661_v51, %v920_v2  ;;  %v467_v54 = vmul.f32 %v661_v51, %v926_v5 }
 0x331   : > { %v464_v55 = vmul.f32 %v663_v52, %v916_v0  ;;  %v465_v56 = vmul.f32 %v663_v52, %v918_v1 }
 0x332   : > { %470 = vst [vmem:[%s242_s28 + $0x10] sm:$0xff] %v466_v53  ;;  %471 = vst [vmem:[%s242_s28 + $0x18] sm:$0xff] %v467_v54 }
 0x333   : > { %468 = vst [vmem:[%s242_s28] sm:$0xff] %v464_v55  ;;  %469 = vst [vmem:[%s242_s28 + $0x8] sm:$0xff] %v465_v56 }
 0x334   : > { %707 = shalt.err (!%p704_p2)
}
 0x335   : > { %s708_s9 = scalar_lea.hbm %s962_s15, 512  ;;  %s712_s13 = scalar_lea.hbm %s1015_s5, 1024 }
 0x336   : > { %p709_p4 = scmp.ne.s32.totalorder %s962_s15, %s708_s9  ;;  %p713_p9 = scmp.lt.u32.totalorder %s962_s15, %s1015_s5 }
 0x337   : > { %p714_p1 = scmp.lt.u32.totalorder %s712_s13, %s708_s9  ;;  %p716_p6 = scmp.lt.u32.totalorder %s708_s9, %s962_s15 }
 0x338   : > { %p710_p5 = pnand %p709_p4, %p1022_p11 }
 0x339   : > { %p715_p3 = por %p714_p1, %p713_p9 }
 0x33a   : > { %p711_p7 = pneg %p710_p5 }
 0x33b   : > { %p717_p12 = por %p716_p6, %p715_p3 }
 0x33d   : > { %p718_p13 = pnand %p717_p12, %p711_p7 }
 0x33f   : > { %721 = shalt.err (!%p718_p13)
}
 0x340   : > { %s770_s28 = smov 256   ;;  %s771_s12 = smov 16  }
 0x341   : > { %602 = dma.vmem_to_hbm [thread:$0]  (%p1022_p11), %s964_s29, 512, %s962_s15, %s473_s22, %s770_s28, %s770_s28, %s771_s12  }
 0x342 PF: > { %s501_s14 = sand.u32 1, %s748_s18   ;;  %p1023_p8 = scmp.ne.s32.totalorder %s1020_s6, 0 }
 0x343   : > { %p1024_p10 = scmp.ge.s32.totalorder %s760_s21, 2  ;;  %s502_s25 = scalar_lea.sflag [#allocation4], %s501_s14 }
 0x345   : > { %p609_p0 = pnand %p1024_p10, %p1023_p8 }
 0x347   : > { %743 = dma.done.wait (!%p609_p0), %s502_s25, 512  }
 0x348   : > { %745 = vsyncadd (!%p609_p0), %s502_s25, 4294966784  ;;  %p18_p2 = scmp.ge.s32.totalorder %s827_s24, 4   ;;  %s1025_s18 = smov %s752_s19 }
 0x349   : > { %s1026_s19 = smov %s756_s20  ;;  %s1027_s20 = smov %s839_s27 }
 0x34a   : > { %s1028_s21 = smov %s827_s24  ;;  %20 = sbr.rel (!%p18_p2) target bundleno = 5 (0x5), region = 85 }
 0x351   :  { %507 = vsyncpa [#allocation3], 1 }
 0x352   :  { %509 = vsyncpa [#allocation3 + $0x1], 1 }
 0x353   :  { %510 = vsyncpa [#allocation4], 1 }
 0x354   :  { %512 = vsyncpa [#allocation4 + $0x1], 1 }

</bundles_post_ra>
